<compile_context>
chip_gen: v5e
topology: v5e:2x2
jax: 0.10.0
libtpu: 0.0.40
codegen_flags: <defaults>
</compile_context>

<pallas_src>
import numpy as np
import jax
import jax.numpy as jnp
from jax.experimental import pallas as pl
from jax.experimental.pallas import tpu as pltpu

# ----------------------------- model sizes -----------------------------------
S, A = 8, 8                # addr_window spatial dims  -> D_IN = 64
T, F = 8, 5                # stats_window dims         -> STATS = 40
D_IN = S * A               # 64
STATS = T * F              # 40
E = 32                     # embedding_dim
H_VAE = 48                 # VAE hidden
H1, H2, H3 = 128, 64, 32   # classifier hidden dims
NUM_CLASSES = 2
BN_EPS = 1e-5

# ------------------------- packed output slab layout (B, 256) ----------------
OUT_W = 256                # [recon(0:64)|garbage | mu(0:32)|logvar(32:64)|logits(64:66)|0]
LOGIT_COL = 64             # logits land at lanes 64:66 of the muv section

# ------------------------- packed weight slab row offsets --------------------
# All offsets are multiples of 16 (clean bf16 sublane packing).  Rows/cols not
# mentioned below are ZERO by construction; downstream matmuls rely on that
# (zero weight rows neutralise garbage activation lanes) -- keep it that way.
R_ENC = 0      # 64 rows : enc_w (x -> h), cols 0:48
R_C1S = 64     # 40 rows : c1_w[E:] * s1 (stats -> h1 part), cols 0:128
R_MUV = 112    # 128 rows: [mu_w | lv_w] rows 0:48, cols 0:64
R_DP = 240     # 64 rows : dec1_w rows 0:32 cols 0:48 ; proj_w rows 32:64 cols 48:80
R_DEC2 = 304   # 128 rows: dec2_w rows 0:48, cols 0:64
R_C1Z = 432    # 128 rows: c1_w[:E] * s1 rows 48:80 (matches zp lanes of dp)
R_C2 = 560     # 128 rows: c2_w * s2, cols 0:64
R_C3 = 688    # 128 rows: c3_w * s3 rows 0:64, cols 0:32
R_C4 = 816     # 128 rows: c4_w rows 0:32, cols 64:66  (logits -> lanes 64:66)
W_ROWS = 944


# ----------------------------- kernel -----------------------------------------
def joint_kernel(x_ref, st_ref, ev_ref, eo_ref, w_ref, b_ref, out_ref):
    f32, bf16 = jnp.float32, jnp.bfloat16
    b = b_ref[...]                      # (8, 128) f32, one bias row per layer

    def mxu(a16, row, k):
        # bf16 x bf16 MXU matmul with f32 accumulation
        return jnp.dot(a16, w_ref[row:row + k, :], preferred_element_type=f32)

    # ---- VAE encoder (K=64) --------------------------------------------------
    h = jnp.maximum(mxu(x_ref[...].astype(bf16), R_ENC, D_IN) + b[0:1, :], 0.0)
    # ---- stats contribution to classifier layer 1 (K=40, off the serial chain)
    c1s = mxu(st_ref[...].astype(bf16), R_C1S, STATS)

    # ---- fused mu | logvar (K=128; h lanes 48:128 are zero -> zero rows) -----
    muv = mxu(h.astype(bf16), R_MUV, 128) + b[1:2, :]   # (bt,128): mu|logvar|0
    mu = muv[:, 0:E]
    std = jnp.exp(0.5 * muv[:, E:2 * E])
    # lane-stacked reparameterisation: [z_vae | z]  (halves M of the dp matmul)
    zz = jnp.concatenate([mu + ev_ref[...] * std, mu + eo_ref[...] * std], axis=1)

    # ---- fused decoder-hidden | projection (K=64) ----------------------------
    dp = jnp.maximum(mxu(zz.astype(bf16), R_DP, 2 * E) + b[2:3, :], 0.0)
    dp16 = dp.astype(bf16)              # lanes 0:48 = hd, 48:80 = zp, 80:128 = 0

    # ---- VAE decoder output (zp lanes hit zero weight rows) ------------------
    recon = jax.nn.sigmoid(mxu(dp16, R_DEC2, 128) + b[3:4, :])

    # ---- classifier (BN folded into weights/biases) --------------------------
    h1 = jnp.maximum(mxu(dp16, R_C1Z, 128) + c1s + b[4:5, :], 0.0)
    h2 = jnp.maximum(mxu(h1.astype(bf16), R_C2, 128) + b[5:6, :], 0.0)
    h3 = jnp.maximum(mxu(h2.astype(bf16), R_C3, 128) + b[6:7, :], 0.0)
    logits = mxu(h3.astype(bf16), R_C4, 128) + b[7:8, :]   # logits at lanes 64:66

    # ---- single lane-dense 256-wide store (128-aligned, unmasked) ------------
    # muv lanes 64:128 are exactly zero, so adding logits (nonzero only at
    # lanes 64:66) packs [mu | logvar | logits] into one 128-lane section.
    out_ref[...] = jnp.concatenate([recon, muv + logits], axis=1)


# ----------------------------- parameter init ---------------------------------
def init_params(key):
    """Synthetic parameters, weights stored pre-transposed as (in, out)."""
    def linear(k, d_in, d_out):
        kw, kb = jax.random.split(k)
        s = 1.0 / float(np.sqrt(d_in))
        w = s * jax.random.normal(kw, (d_in, d_out), jnp.float32)
        bb = s * jax.random.normal(kb, (d_out,), jnp.float32)
        return w, bb

    def bn(k, n):
        kg, kb, km, kv = jax.random.split(k, 4)
        gamma = 1.0 + 0.1 * jax.random.normal(kg, (n,), jnp.float32)
        beta = 0.1 * jax.random.normal(kb, (n,), jnp.float32)
        mean = 0.1 * jax.random.normal(km, (n,), jnp.float32)
        var = 1.0 + 0.1 * jax.random.uniform(kv, (n,), jnp.float32)
        return gamma, beta, mean, var

    ks = jax.random.split(key, 13)
    p = {}
    p["enc_w"], p["enc_b"] = linear(ks[0], D_IN, H_VAE)
    p["mu_w"], p["mu_b"] = linear(ks[1], H_VAE, E)
    p["lv_w"], p["lv_b"] = linear(ks[2], H_VAE, E)
    p["dec1_w"], p["dec1_b"] = linear(ks[3], E, H_VAE)
    p["dec2_w"], p["dec2_b"] = linear(ks[4], H_VAE, D_IN)
    p["proj_w"], p["proj_b"] = linear(ks[5], E, E)
    p["c1_w"], p["c1_b"] = linear(ks[6], E + STATS, H1)
    p["c2_w"], p["c2_b"] = linear(ks[7], H1, H2)
    p["c3_w"], p["c3_b"] = linear(ks[8], H2, H3)
    p["c4_w"], p["c4_b"] = linear(ks[9], H3, NUM_CLASSES)
    p["bn1"] = bn(ks[10], H1)
    p["bn2"] = bn(ks[11], H2)
    p["bn3"] = bn(ks[12], H3)
    return p


def pack_params(p):
    """Fold BN and pack every weight/bias into a bf16 weight slab + f32 bias slab."""
    w = jnp.zeros((W_ROWS, 128), jnp.float32)
    b = jnp.zeros((8, 128), jnp.float32)

    def bn_fold(gamma, beta, mean, var):
        sc = gamma / jnp.sqrt(var + BN_EPS)
        sh = beta - mean * sc
        return sc, sh

    s1, t1 = bn_fold(*p["bn1"])
    s2, t2 = bn_fold(*p["bn2"])
    s3, t3 = bn_fold(*p["bn3"])

    # encoder (fed by x only, K=64)
    w = w.at[R_ENC:R_ENC + D_IN, 0:H_VAE].set(p["enc_w"])
    b = b.at[0, 0:H_VAE].set(p["enc_b"])
    # classifier layer-1 stats part (fed by stats only, K=40; BN1 folded)
    w = w.at[R_C1S:R_C1S + STATS, :].set(p["c1_w"][E:] * s1[None, :])
    # fused mu | logvar
    w = w.at[R_MUV:R_MUV + H_VAE, 0:E].set(p["mu_w"])
    w = w.at[R_MUV:R_MUV + H_VAE, E:2 * E].set(p["lv_w"])
    b = b.at[1, 0:E].set(p["mu_b"])
    b = b.at[1, E:2 * E].set(p["lv_b"])
    # fused decoder-hidden | projection  (K = 64, lane-stacked [z_vae | z])
    w = w.at[R_DP:R_DP + E, 0:H_VAE].set(p["dec1_w"])
    w = w.at[R_DP + E:R_DP + 2 * E, H_VAE:H_VAE + E].set(p["proj_w"])
    b = b.at[2, 0:H_VAE].set(p["dec1_b"])
    b = b.at[2, H_VAE:H_VAE + E].set(p["proj_b"])
    # decoder output (fed by dp; zp lanes 48:80 hit zero rows)
    w = w.at[R_DEC2:R_DEC2 + H_VAE, 0:D_IN].set(p["dec2_w"])
    b = b.at[3, 0:D_IN].set(p["dec2_b"])
    # classifier layer 1, z part (BN1 folded); zp lives at lanes 48:80 of dp
    w = w.at[R_C1Z + H_VAE:R_C1Z + H_VAE + E, :].set(p["c1_w"][:E] * s1[None, :])
    b = b.at[4, :].set(p["c1_b"] * s1 + t1)
    # classifier layers 2/3/4 (BN folded; c4 placed at lanes 64:66 for output pack)
    w = w.at[R_C2:R_C2 + H1, 0:H2].set(p["c2_w"] * s2[None, :])
    b = b.at[5, 0:H2].set(p["c2_b"] * s2 + t2)
    w = w.at[R_C3:R_C3 + H2, 0:H3].set(p["c3_w"] * s3[None, :])
    b = b.at[6, 0:H3].set(p["c3_b"] * s3 + t3)
    w = w.at[R_C4:R_C4 + H3, LOGIT_COL:LOGIT_COL + NUM_CLASSES].set(p["c4_w"])
    b = b.at[7, LOGIT_COL:LOGIT_COL + NUM_CLASSES].set(p["c4_b"])
    return w.astype(jnp.bfloat16), b


# ----------------------------- wrapper ----------------------------------------
def _round_up(x, m):
    return (x + m - 1) // m * m


@jax.jit
def joint_vae_classifier(addr_window, stats_window, eps_vae, eps_out, w_slab, b_slab):
    bsz = addr_window.shape[0]
    x_flat = addr_window.reshape(bsz, -1).astype(jnp.float32)
    stats = stats_window.reshape(bsz, -1).astype(jnp.float32)
    ev = eps_vae.astype(jnp.float32)
    eo = eps_out.astype(jnp.float32)

    # batch tiling: one tile for tiny batches; up to 512-row tiles for big ones,
    # but always >= 2 grid steps so v7x's two TensorCores both get work.
    if bsz <= 128:
        bt = _round_up(bsz, 8)
    else:
        bt = min(512, _round_up((bsz + 1) // 2, 8))
    bp = _round_up(bsz, bt)

    if bp != bsz:
        pad = ((0, bp - bsz), (0, 0))
        x_flat = jnp.pad(x_flat, pad)
        stats = jnp.pad(stats, pad)
        ev = jnp.pad(ev, pad)
        eo = jnp.pad(eo, pad)

    out = pl.pallas_call(
        joint_kernel,
        out_shape=jax.ShapeDtypeStruct((bp, OUT_W), jnp.float32),
        grid=(bp // bt,),
        in_specs=[
            pl.BlockSpec((bt, D_IN), lambda i: (i, 0)),
            pl.BlockSpec((bt, STATS), lambda i: (i, 0)),
            pl.BlockSpec((bt, E), lambda i: (i, 0)),
            pl.BlockSpec((bt, E), lambda i: (i, 0)),
            pl.BlockSpec((W_ROWS, 128), lambda i: (0, 0)),
            pl.BlockSpec((8, 128), lambda i: (0, 0)),
        ],
        out_specs=pl.BlockSpec((bt, OUT_W), lambda i: (i, 0)),
        compiler_params=pltpu.CompilerParams(dimension_semantics=("parallel",)),
    )(x_flat, stats, ev, eo, w_slab, b_slab)

    recon = out[:bsz, 0:D_IN]
    mu = out[:bsz, 128:128 + E]
    logvar = out[:bsz, 128 + E:128 + 2 * E]
    logits = out[:bsz, 128 + LOGIT_COL:128 + LOGIT_COL + NUM_CLASSES]
    return recon, mu, logvar, logits


# ----------------------------- pure-JAX reference ------------------------------
def reference_forward(addr_window, stats_window, eps_vae, eps_out, p):
    hp = jax.lax.Precision.HIGHEST
    bsz = addr_window.shape[0]
    x = addr_window.reshape(bsz, -1)
    st = stats_window.reshape(bsz, -1)

    def lin(a, w, bb):
        return jnp.dot(a, w, precision=hp) + bb

    def bn(a, g, be, m, v):
        return (a - m) / jnp.sqrt(v + BN_EPS) * g + be

    h = jax.nn.relu(lin(x, p["enc_w"], p["enc_b"]))
    mu = lin(h, p["mu_w"], p["mu_b"])
    logvar = lin(h, p["lv_w"], p["lv_b"])
    std = jnp.exp(0.5 * logvar)
    z_vae = mu + eps_vae * std
    hd = jax.nn.relu(lin(z_vae, p["dec1_w"], p["dec1_b"]))
    recon = jax.nn.sigmoid(lin(hd, p["dec2_w"], p["dec2_b"]))
    z = mu + eps_out * std
    zp = jax.nn.relu(lin(z, p["proj_w"], p["proj_b"]))
    cat = jnp.concatenate([zp, st], axis=1)
    h1 = jax.nn.relu(bn(lin(cat, p["c1_w"], p["c1_b"]), *p["bn1"]))
    h2 = jax.nn.relu(bn(lin(h1, p["c2_w"], p["c2_b"]), *p["bn2"]))
    h3 = jax.nn.relu(bn(lin(h2, p["c3_w"], p["c3_b"]), *p["bn3"]))
    logits = lin(h3, p["c4_w"], p["c4_b"])
    return recon, mu, logvar, logits


if __name__ == "__main__":
    key = jax.random.PRNGKey(0)
    k_addr, k_stats, k_e1, k_e2, k_p = jax.random.split(key, 5)

    B = 8
    addr_window = jax.random.normal(k_addr, (B, S, A), jnp.float32)
    stats_window = jax.random.normal(k_stats, (B, T, F), jnp.float32)
    eps_vae = jax.random.normal(k_e1, (B, E), jnp.float32)
    eps_out = jax.random.normal(k_e2, (B, E), jnp.float32)

    params = init_params(k_p)
    w_slab, b_slab = pack_params(params)

    recon, mu, logvar, logits = joint_vae_classifier(
        addr_window, stats_window, eps_vae, eps_out, w_slab, b_slab)
    jax.block_until_ready((recon, mu, logvar, logits))

    assert recon.shape == (B, D_IN)
    assert mu.shape == (B, E)
    assert logvar.shape == (B, E)
    assert logits.shape == (B, NUM_CLASSES)

    r_recon, r_mu, r_lv, r_logits = reference_forward(
        addr_window, stats_window, eps_vae, eps_out, params)
    # Tolerance widened vs. the f32 version: weights + matmul operands are bf16
    # (per perf review), accumulation/elementwise stay f32; ~0.4% per-operand
    # quantisation over a 7-matmul chain needs a few e-2 of slack vs the
    # Precision.HIGHEST f32 reference.
    for got, ref in ((recon, r_recon), (mu, r_mu), (logvar, r_lv), (logits, r_logits)):
        np.testing.assert_allclose(np.asarray(got), np.asarray(ref),
                                   rtol=3e-2, atol=3e-2)

    print("KERNEL_OK")
</pallas_src>

<mosaic_0001>
module attributes {stable_mosaic.version = 11 : i64} {
  func.func @joint_kernel(%arg0: i32, %arg1: memref<8x64xf32, #tpu.memory_space<vmem>>, %arg2: memref<8x40xf32, #tpu.memory_space<vmem>>, %arg3: memref<8x32xf32, #tpu.memory_space<vmem>>, %arg4: memref<8x32xf32, #tpu.memory_space<vmem>>, %arg5: memref<944x128xbf16, #tpu.memory_space<vmem>>, %arg6: memref<8x128xf32, #tpu.memory_space<vmem>>, %arg7: memref<8x256xf32, #tpu.memory_space<vmem>>) attributes {dimension_semantics = [#tpu.dimension_semantics<parallel>], iteration_bounds = array<i64: 1>, scalar_prefetch = 0 : i64, scratch_operands = 0 : i64, tpu.core_type = #tpu.core_type<tc>, window_params = [{transform_indices = @transform_0, window_bounds = array<i64: 8, 64>}, {transform_indices = @transform_1, window_bounds = array<i64: 8, 40>}, {transform_indices = @transform_2, window_bounds = array<i64: 8, 32>}, {transform_indices = @transform_3, window_bounds = array<i64: 8, 32>}, {pipeline_mode = #tpu.pipeline_mode<synchronous>, transform_indices = @transform_4, window_bounds = array<i64: 944, 128>}, {pipeline_mode = #tpu.pipeline_mode<synchronous>, transform_indices = @transform_5, window_bounds = array<i64: 8, 128>}, {transform_indices = @transform_6, window_bounds = array<i64: 8, 256>}]} {
    %c0 = arith.constant 0 : index
    %c0_0 = arith.constant 0 : index
    %0 = vector.load %arg6[%c0, %c0_0] : memref<8x128xf32, #tpu.memory_space<vmem>>, vector<8x128xf32>
    %c0_1 = arith.constant 0 : index
    %c0_2 = arith.constant 0 : index
    %1 = vector.load %arg1[%c0_1, %c0_2] : memref<8x64xf32, #tpu.memory_space<vmem>>, vector<8x64xf32>
    %2 = arith.truncf %1 : vector<8x64xf32> to vector<8x64xbf16>
    %c0_3 = arith.constant 0 : index
    %c0_4 = arith.constant 0 : index
    %3 = vector.load %arg5[%c0_3, %c0_4] : memref<944x128xbf16, #tpu.memory_space<vmem>>, vector<64x128xbf16>
    %cst = arith.constant dense<0.000000e+00> : vector<8x128xf32>
    %4 = tpu.matmul %2, %3, %cst {dimension_numbers = #tpu.dot_dimension_numbers<[1], [0], [0], [1], [0, 0, 1, 1], [], []>} : vector<8x64xbf16>, vector<64x128xbf16>, vector<8x128xf32> -> vector<8x128xf32>
    %5 = vector.extract_strided_slice %0 {offsets = [0, 0], sizes = [1, 128], strides = [1, 1]} : vector<8x128xf32> to vector<1x128xf32>
    %6 = vector.broadcast %5 : vector<1x128xf32> to vector<8x128xf32>
    %7 = arith.addf %4, %6 : vector<8x128xf32>
    %cst_5 = arith.constant 0.000000e+00 : f32
    %8 = vector.broadcast %cst_5 : f32 to vector<8x128xf32>
    %9 = arith.maximumf %7, %8 : vector<8x128xf32>
    %c0_6 = arith.constant 0 : index
    %c0_7 = arith.constant 0 : index
    %10 = vector.load %arg2[%c0_6, %c0_7] : memref<8x40xf32, #tpu.memory_space<vmem>>, vector<8x40xf32>
    %11 = arith.truncf %10 : vector<8x40xf32> to vector<8x40xbf16>
    %c64 = arith.constant 64 : index
    %c0_8 = arith.constant 0 : index
    %12 = vector.load %arg5[%c64, %c0_8] : memref<944x128xbf16, #tpu.memory_space<vmem>>, vector<40x128xbf16>
    %cst_9 = arith.constant dense<0.000000e+00> : vector<8x128xf32>
    %13 = tpu.matmul %11, %12, %cst_9 {dimension_numbers = #tpu.dot_dimension_numbers<[1], [0], [0], [1], [0, 0, 1, 1], [], []>} : vector<8x40xbf16>, vector<40x128xbf16>, vector<8x128xf32> -> vector<8x128xf32>
    %14 = arith.truncf %9 : vector<8x128xf32> to vector<8x128xbf16>
    %c112 = arith.constant 112 : index
    %c0_10 = arith.constant 0 : index
    %15 = vector.load %arg5[%c112, %c0_10] : memref<944x128xbf16, #tpu.memory_space<vmem>>, vector<128x128xbf16>
    %cst_11 = arith.constant dense<0.000000e+00> : vector<8x128xf32>
    %16 = tpu.matmul %14, %15, %cst_11 {dimension_numbers = #tpu.dot_dimension_numbers<[1], [0], [0], [1], [0, 0, 1, 1], [], []>} : vector<8x128xbf16>, vector<128x128xbf16>, vector<8x128xf32> -> vector<8x128xf32>
    %17 = vector.extract_strided_slice %0 {offsets = [1, 0], sizes = [1, 128], strides = [1, 1]} : vector<8x128xf32> to vector<1x128xf32>
    %18 = vector.broadcast %17 : vector<1x128xf32> to vector<8x128xf32>
    %19 = arith.addf %16, %18 : vector<8x128xf32>
    %20 = vector.extract_strided_slice %19 {offsets = [0, 0], sizes = [8, 32], strides = [1, 1]} : vector<8x128xf32> to vector<8x32xf32>
    %21 = vector.extract_strided_slice %19 {offsets = [0, 32], sizes = [8, 32], strides = [1, 1]} : vector<8x128xf32> to vector<8x32xf32>
    %cst_12 = arith.constant 5.000000e-01 : f32
    %22 = vector.broadcast %cst_12 : f32 to vector<8x32xf32>
    %23 = arith.mulf %22, %21 : vector<8x32xf32>
    %24 = math.exp %23 : vector<8x32xf32>
    %c0_13 = arith.constant 0 : index
    %c0_14 = arith.constant 0 : index
    %25 = vector.load %arg3[%c0_13, %c0_14] : memref<8x32xf32, #tpu.memory_space<vmem>>, vector<8x32xf32>
    %26 = arith.mulf %25, %24 : vector<8x32xf32>
    %27 = arith.addf %20, %26 : vector<8x32xf32>
    %c0_15 = arith.constant 0 : index
    %c0_16 = arith.constant 0 : index
    %28 = vector.load %arg4[%c0_15, %c0_16] : memref<8x32xf32, #tpu.memory_space<vmem>>, vector<8x32xf32>
    %29 = arith.mulf %28, %24 : vector<8x32xf32>
    %30 = arith.addf %20, %29 : vector<8x32xf32>
    %31 = tpu.concatenate %27, %30 in 1 : vector<8x32xf32>, vector<8x32xf32> -> vector<8x64xf32>
    %32 = arith.truncf %31 : vector<8x64xf32> to vector<8x64xbf16>
    %c240 = arith.constant 240 : index
    %c0_17 = arith.constant 0 : index
    %33 = vector.load %arg5[%c240, %c0_17] : memref<944x128xbf16, #tpu.memory_space<vmem>>, vector<64x128xbf16>
    %cst_18 = arith.constant dense<0.000000e+00> : vector<8x128xf32>
    %34 = tpu.matmul %32, %33, %cst_18 {dimension_numbers = #tpu.dot_dimension_numbers<[1], [0], [0], [1], [0, 0, 1, 1], [], []>} : vector<8x64xbf16>, vector<64x128xbf16>, vector<8x128xf32> -> vector<8x128xf32>
    %35 = vector.extract_strided_slice %0 {offsets = [2, 0], sizes = [1, 128], strides = [1, 1]} : vector<8x128xf32> to vector<1x128xf32>
    %36 = vector.broadcast %35 : vector<1x128xf32> to vector<8x128xf32>
    %37 = arith.addf %34, %36 : vector<8x128xf32>
    %cst_19 = arith.constant 0.000000e+00 : f32
    %38 = vector.broadcast %cst_19 : f32 to vector<8x128xf32>
    %39 = arith.maximumf %37, %38 : vector<8x128xf32>
    %40 = arith.truncf %39 : vector<8x128xf32> to vector<8x128xbf16>
    %c304 = arith.constant 304 : index
    %c0_20 = arith.constant 0 : index
    %41 = vector.load %arg5[%c304, %c0_20] : memref<944x128xbf16, #tpu.memory_space<vmem>>, vector<128x128xbf16>
    %cst_21 = arith.constant dense<0.000000e+00> : vector<8x128xf32>
    %42 = tpu.matmul %40, %41, %cst_21 {dimension_numbers = #tpu.dot_dimension_numbers<[1], [0], [0], [1], [0, 0, 1, 1], [], []>} : vector<8x128xbf16>, vector<128x128xbf16>, vector<8x128xf32> -> vector<8x128xf32>
    %43 = vector.extract_strided_slice %0 {offsets = [3, 0], sizes = [1, 128], strides = [1, 1]} : vector<8x128xf32> to vector<1x128xf32>
    %44 = vector.broadcast %43 : vector<1x128xf32> to vector<8x128xf32>
    %45 = arith.addf %42, %44 : vector<8x128xf32>
    %46 = arith.negf %45 : vector<8x128xf32>
    %47 = math.exp %46 : vector<8x128xf32>
    %cst_22 = arith.constant 1.000000e+00 : f32
    %48 = vector.broadcast %cst_22 : f32 to vector<8x128xf32>
    %49 = arith.addf %48, %47 : vector<8x128xf32>
    %50 = arith.divf %48, %49 : vector<8x128xf32>
    %c432 = arith.constant 432 : index
    %c0_23 = arith.constant 0 : index
    %51 = vector.load %arg5[%c432, %c0_23] : memref<944x128xbf16, #tpu.memory_space<vmem>>, vector<128x128xbf16>
    %cst_24 = arith.constant dense<0.000000e+00> : vector<8x128xf32>
    %52 = tpu.matmul %40, %51, %cst_24 {dimension_numbers = #tpu.dot_dimension_numbers<[1], [0], [0], [1], [0, 0, 1, 1], [], []>} : vector<8x128xbf16>, vector<128x128xbf16>, vector<8x128xf32> -> vector<8x128xf32>
    %53 = arith.addf %52, %13 : vector<8x128xf32>
    %54 = vector.extract_strided_slice %0 {offsets = [4, 0], sizes = [1, 128], strides = [1, 1]} : vector<8x128xf32> to vector<1x128xf32>
    %55 = vector.broadcast %54 : vector<1x128xf32> to vector<8x128xf32>
    %56 = arith.addf %53, %55 : vector<8x128xf32>
    %cst_25 = arith.constant 0.000000e+00 : f32
    %57 = vector.broadcast %cst_25 : f32 to vector<8x128xf32>
    %58 = arith.maximumf %56, %57 : vector<8x128xf32>
    %59 = arith.truncf %58 : vector<8x128xf32> to vector<8x128xbf16>
    %c560 = arith.constant 560 : index
    %c0_26 = arith.constant 0 : index
    %60 = vector.load %arg5[%c560, %c0_26] : memref<944x128xbf16, #tpu.memory_space<vmem>>, vector<128x128xbf16>
    %cst_27 = arith.constant dense<0.000000e+00> : vector<8x128xf32>
    %61 = tpu.matmul %59, %60, %cst_27 {dimension_numbers = #tpu.dot_dimension_numbers<[1], [0], [0], [1], [0, 0, 1, 1], [], []>} : vector<8x128xbf16>, vector<128x128xbf16>, vector<8x128xf32> -> vector<8x128xf32>
    %62 = vector.extract_strided_slice %0 {offsets = [5, 0], sizes = [1, 128], strides = [1, 1]} : vector<8x128xf32> to vector<1x128xf32>
    %63 = vector.broadcast %62 : vector<1x128xf32> to vector<8x128xf32>
    %64 = arith.addf %61, %63 : vector<8x128xf32>
    %cst_28 = arith.constant 0.000000e+00 : f32
    %65 = vector.broadcast %cst_28 : f32 to vector<8x128xf32>
    %66 = arith.maximumf %64, %65 : vector<8x128xf32>
    %67 = arith.truncf %66 : vector<8x128xf32> to vector<8x128xbf16>
    %c688 = arith.constant 688 : index
    %c0_29 = arith.constant 0 : index
    %68 = vector.load %arg5[%c688, %c0_29] : memref<944x128xbf16, #tpu.memory_space<vmem>>, vector<128x128xbf16>
    %cst_30 = arith.constant dense<0.000000e+00> : vector<8x128xf32>
    %69 = tpu.matmul %67, %68, %cst_30 {dimension_numbers = #tpu.dot_dimension_numbers<[1], [0], [0], [1], [0, 0, 1, 1], [], []>} : vector<8x128xbf16>, vector<128x128xbf16>, vector<8x128xf32> -> vector<8x128xf32>
    %70 = vector.extract_strided_slice %0 {offsets = [6, 0], sizes = [1, 128], strides = [1, 1]} : vector<8x128xf32> to vector<1x128xf32>
    %71 = vector.broadcast %70 : vector<1x128xf32> to vector<8x128xf32>
    %72 = arith.addf %69, %71 : vector<8x128xf32>
    %cst_31 = arith.constant 0.000000e+00 : f32
    %73 = vector.broadcast %cst_31 : f32 to vector<8x128xf32>
    %74 = arith.maximumf %72, %73 : vector<8x128xf32>
    %75 = arith.truncf %74 : vector<8x128xf32> to vector<8x128xbf16>
    %c816 = arith.constant 816 : index
    %c0_32 = arith.constant 0 : index
    %76 = vector.load %arg5[%c816, %c0_32] : memref<944x128xbf16, #tpu.memory_space<vmem>>, vector<128x128xbf16>
    %cst_33 = arith.constant dense<0.000000e+00> : vector<8x128xf32>
    %77 = tpu.matmul %75, %76, %cst_33 {dimension_numbers = #tpu.dot_dimension_numbers<[1], [0], [0], [1], [0, 0, 1, 1], [], []>} : vector<8x128xbf16>, vector<128x128xbf16>, vector<8x128xf32> -> vector<8x128xf32>
    %78 = vector.extract_strided_slice %0 {offsets = [7, 0], sizes = [1, 128], strides = [1, 1]} : vector<8x128xf32> to vector<1x128xf32>
    %79 = vector.broadcast %78 : vector<1x128xf32> to vector<8x128xf32>
    %80 = arith.addf %77, %79 : vector<8x128xf32>
    %81 = arith.addf %19, %80 : vector<8x128xf32>
    %82 = tpu.concatenate %50, %81 in 1 : vector<8x128xf32>, vector<8x128xf32> -> vector<8x256xf32>
    %c0_34 = arith.constant 0 : index
    %c0_35 = arith.constant 0 : index
    %83 = vector.load %arg7[%c0_34, %c0_35] : memref<8x256xf32, #tpu.memory_space<vmem>>, vector<8x256xf32>
    tpu.vector_store %arg7[%c0_34, %c0_35], %82 {strides = array<i32>} : memref<8x256xf32, #tpu.memory_space<vmem>>, vector<8x256xf32>,
    return
  }
  func.func @transform_0(%arg0: i32) -> (i32, i32) {
    %c0_i32 = arith.constant 0 : i32
    %c0_i32_0 = arith.constant 0 : i32
    return %arg0, %c0_i32 : i32, i32
  }
  func.func @transform_1(%arg0: i32) -> (i32, i32) {
    %c0_i32 = arith.constant 0 : i32
    %c0_i32_0 = arith.constant 0 : i32
    return %arg0, %c0_i32 : i32, i32
  }
  func.func @transform_2(%arg0: i32) -> (i32, i32) {
    %c0_i32 = arith.constant 0 : i32
    %c0_i32_0 = arith.constant 0 : i32
    return %arg0, %c0_i32 : i32, i32
  }
  func.func @transform_3(%arg0: i32) -> (i32, i32) {
    %c0_i32 = arith.constant 0 : i32
    %c0_i32_0 = arith.constant 0 : i32
    return %arg0, %c0_i32 : i32, i32
  }
  func.func @transform_4(%arg0: i32) -> (i32, i32) {
    %c0_i32 = arith.constant 0 : i32
    %c0_i32_0 = arith.constant 0 : i32
    %c0_i32_1 = arith.constant 0 : i32
    return %c0_i32, %c0_i32_0 : i32, i32
  }
  func.func @transform_5(%arg0: i32) -> (i32, i32) {
    %c0_i32 = arith.constant 0 : i32
    %c0_i32_0 = arith.constant 0 : i32
    %c0_i32_1 = arith.constant 0 : i32
    return %c0_i32, %c0_i32_0 : i32, i32
  }
  func.func @transform_6(%arg0: i32) -> (i32, i32) {
    %c0_i32 = arith.constant 0 : i32
    %c0_i32_0 = arith.constant 0 : i32
    return %arg0, %c0_i32 : i32, i32
  }
}

</mosaic_0001>

<bundles_post_ra>
// kernel: joint_vae_classifier.1
= control target key start
LH: loop header
LB: loop body
LE: loop exit
PB: predicated region body
PF: predicated region fallthrough
CT: control target
= control target key end

     0   :  { %11 = vsyncpa [#allocation3], 0  ;;  %s1042_s24 = smov [#allocation2]   ;;  %s1043_s26 = smov 64   ;;  %s1124_s0 = inlined_call_operand.vmem [shape: f32[8,64], index: 0, kind: input, shape index: {}]   ;;  %s1125_s1 = inlined_call_operand.vmem [shape: f32[8,40], index: 1, kind: input, shape index: {}]   ;;  %s1126_s2 = inlined_call_operand.vmem [shape: f32[8,32], index: 2, kind: input, shape index: {}]   ;;  %s1127_s3 = inlined_call_operand.vmem [shape: f32[8,32], index: 3, kind: input, shape index: {}]   ;;  %s1128_s4 = inlined_call_operand.hbm [shape: bf16[944,128], index: 4, kind: input, shape index: {}]   ;;  %s1129_s5 = inlined_call_operand.vmem [shape: f32[8,128], index: 5, kind: input, shape index: {}]   ;;  %s1130_s6 = inlined_call_operand.vmem [shape: f32[8,256], index: 6, kind: output, shape index: {}]  }
   0x1   :  { %s24_s23 = sshll.u32 %s1128_s4, 4  ;;  %s26_s25 = sshll.u32 %s1042_s24, 4  ;;  %s25_s23 = int_to_ptr.hbm [resolvable:$true] %s24_s23  ;;  %s27_s25 = int_to_ptr.vmem [resolvable:$true] %s26_s25 }
   0x2   :  { %s1044_s27 = smov 4  }
   0x3   :  { %32 = dma.hbm_to_vmem [thread:$0]  %s25_s23, 7552, %s27_s25, [#allocation3], %s1043_s26, %s1043_s26, %s1044_s27  }
   0x4   :  { %1040 = dma.done.wait [#allocation3], 7552  }
   0x5   :  { %1041 = vsyncadd [#allocation3], 4294959744  ;;  %v950_v0 = vld [vmem:[#allocation2 + $0x18] sm:$0xff]  ;;  %v960_v1 = vld [vmem:[#allocation2 + $0x70] sm:$0xff]  ;;  %vm76_vm0 = vcmask 523264   ;;  %vm120_vm1 = vcmask 1043456  }
   0x6   :  { %84 = vmatpush.bf16.msra.mxu0 %v950_v0  ;;  %v949_v2 = vld [vmem:[#allocation2 + $0x10] sm:$0xff]  ;;  %203 = vmatpush.bf16.msra.mxu2 %v960_v1  ;;  %v959_v3 = vld [vmem:[#allocation2 + $0x68] sm:$0xff]  ;;  %v958_v5 = vld [vmem:[#allocation2 + $0x60] sm:$0xff]  ;;  %vm116_vm2 = vcmask 326656   ;;  %vm233_vm3 = vcmask 261120  }
   0x7   :  { %v948_v4 = vld [vmem:[#allocation2 + $0x8] sm:$0xff]  ;;  %v947_v6 = vld [vmem:[#allocation2] sm:$0xff]  ;;  %v957_v8 = vld [vmem:[#allocation2 + $0x58] sm:$0xff] }
   0x8   :  { %v41_v7 = vld [vmem:[%s1124_s0] sm:$0xff]  ;;  %v956_v10 = vld [vmem:[#allocation2 + $0x50] sm:$0xff]  ;;  %v955_v11 = vld [vmem:[#allocation2 + $0x48] sm:$0xff]  ;;  %s1045_s0 = smov 96  }
   0x9   :  { %v42_v9 = vpack.c.bf16 %v41_v7, %v41_v7  ;;  %v954_v12 = vld [vmem:[#allocation2 + $0x40] sm:$0xff]  ;;  %v953_v13 = vld [vmem:[#allocation2 + $0x38] sm:$0xff]  ;;  %v100_v28 = vld [vmem:[#allocation2 + $0x30] sm:$0xf] }
   0xa   :  { %85 = vmatpush.bf16.msra.mxu0 %v949_v2  ;;  %204 = vmatpush.bf16.msra.mxu2 %v959_v3  ;;  %v1092_v14 = vld [vmem:[%s1129_s5] sm:$0xff]  ;;  %v110_v29 = vunpack.c.l.b16 %v100_v28  ;;  %v952_v32 = vld [vmem:[#allocation2 + $0x28] sm:$0xff]  ;;  %v964_v35 = vld [vmem:[#allocation2 + $0x90] sm:$0xff] }
   0xb   :  { %v51_v15 = vperm.slane %v1092_v14, 0  ;;  %v154_v21 = vperm.slane %v1092_v14, 1  ;;  %v951_v33 = vld [vmem:[#allocation2 + $0x20] sm:$0xff]  ;;  %v963_v37 = vld [vmem:[#allocation2 + $0x88] sm:$0xff]  ;;  %v961_v39 = vld [vmem:[#allocation2 + $0x78] sm:$0xff] }
   0xc   :  { %v113_v30 = vpack.c.b16 %v110_v29, %v110_v29  ;;  %v94_v34 = vld [vmem:[%s1125_s1] sm:$0xff]  ;;  %s1046_s1 = smov 32   ;;  %v972_v44 = vld [vmem:[#allocation2 + $0xd0] sm:$0xff]  ;;  %v971_v46 = vld [vmem:[#allocation2 + $0xc8] sm:$0xff] }
   0xd   :  { %v95_v36 = vpack.c.bf16 %v94_v34, %v94_v34  ;;  %v962_v38 = vld [vmem:[#allocation2 + $0x80] sm:$0xff]  ;;  %v980_v45 = vld [vmem:[#allocation2 + $0x110] sm:$0xff]  ;;  %352 = vmatpush.bf16.msra.mxu1 %v972_v44  ;;  %v979_v47 = vld [vmem:[#allocation2 + $0x108] sm:$0xff] }
   0xe   :  { %86 = vmatpush.bf16.msra.mxu0 %v948_v4  ;;  %205 = vmatpush.bf16.msra.mxu2 %v958_v5  ;;  %v122_v31 = vsel %vm120_vm1, %v113_v30, 0  ;;  %v226_v40 = vld [vmem:[%s1127_s3] sm:$0xff]  ;;  %v969_v50 = vld [vmem:[#allocation2 + $0xb8] sm:$0xff]  ;;  %v968_v52 = vld [vmem:[#allocation2 + $0xb0] sm:$0xff] }
   0xf   :  { %129 = vmatpush.bf16.msra.mxu3 %v122_v31  ;;  %v970_v48 = vld [vmem:[#allocation2 + $0xc0] sm:$0xff]  ;;  %v977_v51 = vld [vmem:[#allocation2 + $0xf8] sm:$0xff]  ;;  %v976_v53 = vld [vmem:[#allocation2 + $0xf0] sm:$0xff] }
  0x10   :  { %v978_v49 = vld [vmem:[#allocation2 + $0x100] sm:$0xff]  ;;  %v967_v54 = vld [vmem:[#allocation2 + $0xa8] sm:$0xff]  ;;  %v965_v2 = vld [vmem:[#allocation2 + $0x98] sm:$0xff] }
  0x11   :  { %353 = vmatpush.bf16.msra.mxu1 %v971_v46  ;;  %v975_v55 = vld [vmem:[#allocation2 + $0xe8] sm:$0xff]  ;;  %v219_v56 = vld [vmem:[%s1126_s2] sm:$0xff]  ;;  %v973_v3 = vld [vmem:[#allocation2 + $0xd8] sm:$0xff] }
  0x12   :  { %87 = vmatpush.bf16.msra.mxu0 %v947_v6  ;;  %206 = vmatpush.bf16.msra.mxu2 %v957_v8  ;;  %v966_v0 = vld [vmem:[#allocation2 + $0xa0] sm:$0xff]  ;;  %v988_v4 = vld [vmem:[#allocation2 + $0x150] sm:$0xff]  ;;  %v987_v5 = vld [vmem:[#allocation2 + $0x148] sm:$0xff] }
  0x13   :  { %130 = vmatpush.bf16.msra.mxu3 %v952_v32  ;;  %v974_v1 = vld [vmem:[#allocation2 + $0xe0] sm:$0xff]  ;;  %v985_v7 = vld [vmem:[#allocation2 + $0x138] sm:$0xff]  ;;  %v984_v8 = vld [vmem:[#allocation2 + $0x130] sm:$0xff] }
  0x14   :  { %v986_v6 = vld [vmem:[#allocation2 + $0x140] sm:$0xff] }
  0x15   :  { %727 = vmatmul.msk.bf16.vlgmr.msra.gmra.mxu0 %vm76_vm0, %v42_v9  ;;  %354 = vmatpush.bf16.msra.mxu1 %v970_v48  ;;  %v983_v9 = vld [vmem:[#allocation2 + $0x128] sm:$0xff]  ;;  %v994_v31 = vld [vmem:[#allocation2 + $0x180] sm:$0xff] }
  0x16   :  { %207 = vmatpush.bf16.msra.mxu2 %v956_v10  ;;  %448 = vmatpush.bf16.msrb.mxu0 %v980_v45  ;;  %v244_v10 = vperm.slane %v1092_v14, 2 }
  0x17   :  { %131 = vmatpush.bf16.msra.mxu3 %v951_v33 }
  0x19   :  { %355 = vmatpush.bf16.msra.mxu1 %v969_v50  ;;  %v990_v50 = vld [vmem:[#allocation2 + $0x160] sm:$0xff] }
  0x1a   :  { %208 = vmatpush.bf16.msra.mxu2 %v955_v11  ;;  %736 = vmatmul.msk.bf16.vlgmr.msra.gmra.mxu3 %vm116_vm2, %v95_v36 }
  0x1b   :  { %276 = vmatpush.bf16.msrb.mxu3 %v964_v35  ;;  %449 = vmatpush.bf16.msrb.mxu0 %v979_v47  ;;  %v993_v35 = vld [vmem:[#allocation2 + $0x178] sm:$0xff] }
  0x1d   :  { %356 = vmatpush.bf16.msra.mxu1 %v968_v52  ;;  %v1004_v52 = vld [vmem:[#allocation2 + $0x1d0] sm:$0xff] }
  0x1e   :  { %209 = vmatpush.bf16.msra.mxu2 %v954_v12 }
  0x1f   :  { %277 = vmatpush.bf16.msrb.mxu3 %v963_v37  ;;  %450 = vmatpush.bf16.msrb.mxu0 %v978_v49 }
  0x21   :  { %357 = vmatpush.bf16.msra.mxu1 %v967_v54  ;;  %v1002_v54 = vld [vmem:[#allocation2 + $0x1c0] sm:$0xff] }
  0x22   :  { %210 = vmatpush.bf16.msra.mxu2 %v953_v13 }
  0x23   :  { %278 = vmatpush.bf16.msrb.mxu3 %v962_v38  ;;  %451 = vmatpush.bf16.msrb.mxu0 %v977_v51  ;;  %v992_v38 = vld [vmem:[#allocation2 + $0x170] sm:$0xff]  ;;  %v989_v51 = vld [vmem:[#allocation2 + $0x158] sm:$0xff] }
  0x25   :  { %358 = vmatpush.bf16.msra.mxu1 %v966_v0  ;;  %v998_v0 = vld [vmem:[#allocation2 + $0x1a0] sm:$0xff] }
  0x27   :  { %279 = vmatpush.bf16.msrb.mxu3 %v961_v39  ;;  %452 = vmatpush.bf16.msrb.mxu0 %v976_v53  ;;  %v991_v39 = vld [vmem:[#allocation2 + $0x168] sm:$0xff] }
  0x28   :  { %v1003_v53 = vld [vmem:[#allocation2 + $0x1c8] sm:$0xff] }
  0x29   :  { %359 = vmatpush.bf16.msra.mxu1 %v965_v2  ;;  %v561_v2 = vperm.slane %v1092_v14, 6 }
  0x2b   :  { %453 = vmatpush.bf16.msrb.mxu0 %v975_v55  ;;  %530 = vmatpush.bf16.msra.mxu3 %v988_v4  ;;  %v1001_v55 = vld [vmem:[#allocation2 + $0x1b8] sm:$0xff] }
  0x2d   :  { %690 = vmatpush.bf16.msrb.mxu1 %v1004_v52 }
  0x2f   :  { %454 = vmatpush.bf16.msrb.mxu0 %v974_v1  ;;  %531 = vmatpush.bf16.msra.mxu3 %v987_v5  ;;  %v997_v1 = vld [vmem:[#allocation2 + $0x198] sm:$0xff] }
  0x31   :  { %691 = vmatpush.bf16.msrb.mxu1 %v1003_v53 }
  0x33   :  { %455 = vmatpush.bf16.msrb.mxu0 %v973_v3  ;;  %532 = vmatpush.bf16.msra.mxu3 %v986_v6 }
  0x35   :  { %692 = vmatpush.bf16.msrb.mxu1 %v1002_v54 }
  0x37   :  { %533 = vmatpush.bf16.msra.mxu3 %v985_v7 }
  0x39   :  { %693 = vmatpush.bf16.msrb.mxu1 %v1001_v55 }
  0x3b   :  { %534 = vmatpush.bf16.msra.mxu3 %v984_v8  ;;  %v641_v8 = vperm.slane %v1092_v14, 7 }
  0x3f   :  { %535 = vmatpush.bf16.msra.mxu3 %v983_v9 }
  0x92   :  { %v89_v16 = vpop.f32.mrf.mxu0 }
  0x93   :  { %v90_v17 = vadd.f32 %v89_v16, %v51_v15 }
  0x95   :  { %v93_v18 = vmax.f32 %v90_v17, 0.0  ;;  %v982_v17 = vld [vmem:[#allocation2 + $0x120] sm:$0xff] }
  0x96   :  { %536 = vmatpush.bf16.msra.mxu3 %v982_v17 }
  0x97   :  { %v137_v19 = vpack.c.bf16 %v93_v18, %v93_v18  ;;  %v981_v18 = vld [vmem:[#allocation2 + $0x118] sm:$0xff] }
  0x99   :  { %211 = vmatmul.bf16.vlgmr.msra.gmra.mxu2 %v137_v19  ;;  %v303_v19 = vperm.slane %v1092_v14, 3 }
  0x9a   :  { %v91_v20 = vpop.f32.mrf.mxu0  ;;  %537 = vmatpush.bf16.msra.mxu3 %v981_v18 }
  0x9b   :  { %v461_v20 = vperm.slane %v1092_v14, 4 }
  0x9d   :  { %v133_v62 = vpop.f32.mrf.mxu3 }
  0xa5   :  { %v135_v63 = vpop.f32.mrf.mxu3 }
 0x11c   :  { %v212_v22 = vpop.f32.mrf.mxu2 }
 0x11d   :  { %v1096_v23 = vadd.f32 %v212_v22, %v154_v21  ;;  %v996_v21 = vld [vmem:[#allocation2 + $0x190] sm:$0xff] }
 0x11e   :  { %610 = vmatpush.bf16.msrb.mxu2 %v996_v21 }
 0x11f   :  { %v216_v24 = vmul.f32 0.5, %v1096_v23 }
 0x121   :  { %v217_v25 = vmul.f32 1.442695, %v216_v24 }
 0x123   :  { %1010 = vpow2.f32 %v217_v25 }
 0x124   :  { %v214_v26 = vpop.f32.mrf.mxu2 }
 0x129   :  { %v1011_v27 = vpop.eup %1010 }
 0x12a   :  { %221 = vrot.lane.b32.xlu0 %v1011_v27, %s1045_s0  ;;  %v995_v27 = vld [vmem:[#allocation2 + $0x188] sm:$0xff] }
 0x12b   :  { %611 = vmatpush.bf16.msrb.mxu2 %v995_v27 }
 0x12f   :  { %612 = vmatpush.bf16.msrb.mxu2 %v994_v31 }
 0x133   :  { %613 = vmatpush.bf16.msrb.mxu2 %v993_v35 }
 0x137   :  { %614 = vmatpush.bf16.msrb.mxu2 %v992_v38 }
 0x13b   :  { %615 = vmatpush.bf16.msrb.mxu2 %v991_v39 }
 0x13f   :  { %616 = vmatpush.bf16.msrb.mxu2 %v990_v50 }
 0x143   :  { %617 = vmatpush.bf16.msrb.mxu2 %v989_v51 }
 0x19c   :  { %v222_v41 = vpop.permute.xlu0 %221 }
 0x19d   :  { %v227_v42 = vmul.f32 %v226_v40, %v222_v41  ;;  %v224_v57 = vmul.f32 %v222_v41, %v219_v56  ;;  %v1000_v56 = vld [vmem:[#allocation2 + $0x1b0] sm:$0xff] }
 0x19e   :  { %694 = vmatpush.bf16.msrb.mxu1 %v1000_v56 }
 0x19f   :  { %v228_v43 = vadd.f32 %v227_v42, %v1096_v23  ;;  %v225_v58 = vadd.f32 %v224_v57, %v1096_v23  ;;  %v999_v57 = vld [vmem:[#allocation2 + $0x1a8] sm:$0xff] }
 0x1a1   :  { %230 = vrot.lane.b32.xlu0 %v228_v43, %s1046_s1 }
 0x1a2   :  { %695 = vmatpush.bf16.msrb.mxu1 %v999_v57 }
 0x1a6   :  { %696 = vmatpush.bf16.msrb.mxu1 %v998_v0 }
 0x1aa   :  { %697 = vmatpush.bf16.msrb.mxu1 %v997_v1 }
 0x213   :  { %v231_v59 = vpop.permute.xlu0 %230 }
 0x214   :  { %v234_v60 = vsel %vm233_vm3, %v225_v58, %v231_v59  ;;  %v481_v58 = vperm.slane %v1092_v14, 5 }
 0x215   :  { %v235_v61 = vpack.c.bf16 %v234_v60, %v234_v60 }
 0x217   :  { %785 = vmatmul.msk.bf16.vlgmr.msrb.gmra.mxu3 %vm76_vm0, %v235_v61 }
 0x29a   :  { %v281_v11 = vpop.f32.mrf.mxu3 }
 0x29b   :  { %v282_v12 = vadd.f32 %v281_v11, %v244_v10 }
 0x29d   :  { %v285_v13 = vmax.f32 %v282_v12, 0.0 }
 0x29f   :  { %v286_v15 = vpack.c.bf16 %v285_v13, %v285_v13 }
 0x2a1   :  { %360 = vmatmul.bf16.vlgmr.msra.gmra.mxu1 %v286_v15  ;;  %456 = vmatmul.bf16.vlgmr.msrb.gmra.mxu0 %v286_v15 }
 0x2a2   :  { %v283_v16 = vpop.f32.mrf.mxu3 }
 0x31e   :  { %v361_v22 = vpop.f32.mrf.mxu1  ;;  %v457_v24 = vpop.f32.mrf.mxu0 }
 0x31f   :  { %v362_v25 = vadd.f32 %v361_v22, %v303_v19  ;;  %v458_v26 = vadd.f32 %v457_v24, %v133_v62 }
 0x321   :  { %v818_v28 = vmul.f32 -1.442695, %v362_v25  ;;  %v462_v29 = vadd.f32 %v461_v20, %v458_v26 }
 0x323   :  { %1012 = vpow2.f32 %v818_v28  ;;  %v463_v30 = vmax.f32 %v462_v29, 0.0 }
 0x325   :  { %v464_v32 = vpack.c.bf16 %v463_v30, %v463_v30 }
 0x326   :  { %v363_v33 = vpop.f32.mrf.mxu1  ;;  %v459_v34 = vpop.f32.mrf.mxu0 }
 0x327   :  { %538 = vmatmul.bf16.vlgmr.msra.gmra.mxu3 %v464_v32 }
 0x329   :  { %v1013_v36 = vpop.eup %1012 }
 0x32a   :  { %v368_v37 = vadd.f32 1.0, %v1013_v36 }
 0x32c   :  { %1014 = vrcp.f32 %v368_v37  ;;  %v380_v43 = vand.u32 2147483648, %v368_v37  ;;  %v378_v45 = vand.u32 2147483647, %v368_v37  ;;  %vm374_vm5 = vweird.f32 %v368_v37 }
 0x32e   :  { %v381_v47 = vor.u32 1.1754944e-38, %v380_v43  ;;  %vm379_vm7 = vcmp.eq.f32.partialorder %v378_v45, 8.507059e+37 }
 0x332   :  { %v1015_v40 = vpop.eup %1014 }
 0x333   :  { %v370_v41 = vmul.f32 %v1015_v40, %v368_v37  ;;  %vm375_vm4 = vweird.f32 %v1015_v40 }
 0x334   :  { %vm376_vm6 = vmor %vm374_vm5, %vm375_vm4 }
 0x335   :  { %v371_v42 = vsub.f32 1.0, %v370_v41 }
 0x337   :  { %v372_v44 = vmul.f32 %v1015_v40, %v371_v42 }
 0x339   :  { %v373_v46 = vadd.f32 %v1015_v40, %v372_v44 }
 0x33b   :  { %v377_v48 = vsel %vm376_vm6, %v1015_v40, %v373_v46 }
 0x33c   :  { %v382_v49 = vsel %vm379_vm7, %v381_v47, %v377_v48 }
 0x33d   :  { %704 = vst [vmem:[%s1130_s6] sm:$0xff] %v382_v49 }
 0x3aa   :  { %v539_v59 = vpop.f32.mrf.mxu3 }
 0x3ab   :  { %v540_v60 = vadd.f32 %v539_v59, %v481_v58 }
 0x3ad   :  { %v543_v61 = vmax.f32 %v540_v60, 0.0 }
 0x3af   :  { %v544_v62 = vpack.c.bf16 %v543_v61, %v543_v61 }
 0x3b1   :  { %618 = vmatmul.bf16.vlgmr.msrb.gmra.mxu2 %v544_v62 }
 0x3b2   :  { %v541_v63 = vpop.f32.mrf.mxu3 }
 0x434   :  { %v619_v3 = vpop.f32.mrf.mxu2 }
 0x435   :  { %v620_v4 = vadd.f32 %v619_v3, %v561_v2 }
 0x437   :  { %v623_v5 = vmax.f32 %v620_v4, 0.0 }
 0x439   :  { %v624_v6 = vpack.c.bf16 %v623_v5, %v623_v5 }
 0x43b   :  { %698 = vmatmul.bf16.vlgmr.msrb.gmra.mxu1 %v624_v6 }
 0x43c   :  { %v621_v7 = vpop.f32.mrf.mxu2 }
 0x4b8   :  { %v699_v9 = vpop.f32.mrf.mxu1 }
 0x4b9   :  { %v700_v10 = vadd.f32 %v699_v9, %v641_v8 }
 0x4bb   :  { %v703_v11 = vadd.f32 %v700_v10, %v1096_v23 }
 0x4bd   :  { %705 = vst [vmem:[%s1130_s6 + $0x8] sm:$0xff] %v703_v11 }
 0x4c0   :  { %v701_v12 = vpop.f32.mrf.mxu1 }
 0x4c1   :  { %710 = vsyncpa [#allocation3], 1 }

</bundles_post_ra>
